<compile_context>
chip_gen: v5e
topology: v5e:2x2
jax: 0.10.0
libtpu: 0.0.40
codegen_flags: <defaults>
</compile_context>

<pallas_src>
import math
from functools import partial

import jax
import jax.numpy as jnp
from jax.experimental import pallas as pl
from jax.experimental.pallas import tpu as pltpu

# ---- module hyperparameters (from the PyTorch source) ----
BLOCK_SIZE = 8      # max sequence length
N_EMBD = 32         # embedding dim (C)
NUM_HEADS = 4
HEAD_SIZE = 8       # NUM_HEADS * HEAD_SIZE == N_EMBD
NEG_INF = -1e30


def _mha_kernel(x_ref, wqkv_ref, bqkv_ref, hmask_ref, bias_ref, o_ref, *, B, T, H, HS):
    """Single step, all batches and all heads stacked.

    x_ref:     (B*T, C)       input activations
    wqkv_ref:  (C, 3*H*HS)    packed [Q | K | V] weights, head-major; Q columns pre-scaled by 1/sqrt(C)
    bqkv_ref:  (1, 3*H*HS)    packed biases (Q part pre-scaled)
    hmask_ref: (H*T, H*HS)    1.0 where column-head == row-head (row r -> head r // T), else 0.0
    bias_ref:  (H*T, T)       additive causal bias: 0 where key <= query (query = r % T), else -1e30
    o_ref:     (B*T, H*HS)    lane-dense concatenated head outputs
    """
    HHS = H * HS

    xf = x_ref[...]                                            # (B*T, C)
    hmask = hmask_ref[...]                                     # (H*T, H*HS)

    # Fused Q/K/V projection for every head: one MXU push + one VPU bias add.
    qkv = jnp.dot(xf, wqkv_ref[...],
                  preferred_element_type=jnp.float32) + bqkv_ref[...]   # (B*T, 3*H*HS)
    q = qkv[:, 0 * HHS:1 * HHS].reshape(B, T, HHS)             # free leading-dim reshapes
    k = qkv[:, 1 * HHS:2 * HHS].reshape(B, T, HHS)
    v = qkv[:, 2 * HHS:3 * HHS].reshape(B, T, HHS)

    # Block-diagonal Q: row r = h*T + t holds q[b, t, :] with only head h's columns kept, so a
    # single batched matmul against full-width K yields every head's scores at once.
    q_bd = jnp.concatenate([q] * H, axis=1) * hmask[None]      # (B, H*T, H*HS)
    s = jnp.einsum('brc,bsc->brs', q_bd, k,
                   preferred_element_type=jnp.float32)         # (B, H*T, T)

    # Single causal-mask application for all heads/batches (precomputed additive bias).
    s = s + bias_ref[...][None]

    # Numerically-stable softmax over keys (exact divide for reference parity).
    m = jnp.max(s, axis=-1, keepdims=True)
    e = jnp.exp(s - m)
    p = e / jnp.sum(e, axis=-1, keepdims=True)                 # (B, H*T, T)

    # TODO(synk): nn.Dropout(p=0.2) on attention weights / concat output -> identity (eval mode).

    # One batched P @ V; row r only needs its own head's output columns, so zero the rest and
    # fold the H row-groups back onto the T rows (vreg-aligned sublane slices + (H-1) VPU adds).
    pv = jnp.einsum('brs,bsf->brf', p, v,
                    preferred_element_type=jnp.float32)        # (B, H*T, H*HS)
    pv = pv * hmask[None]
    out = pv[:, 0:T, :]
    for h in range(1, H):                                      # head-group fold only (no compute)
        out = out + pv[:, h * T:(h + 1) * T, :]                # (B, T, H*HS)

    # Lane-dense store of the full concatenated result.
    # (last dim = H*HS = 32 lanes; padding to 128 lanes only pays off at larger model sizes)
    o_ref[...] = out.reshape(B * T, HHS).astype(o_ref.dtype)


def pack_mha_params(wq, wk, wv, bq, bk, bv, *, block_size=BLOCK_SIZE):
    """One-time parameter packing, hoisted OUT of the per-call path.

    w*: (H, C, HS); b*: (H, 1, HS).  Returns everything the kernel consumes, including the
    1/sqrt(C)-scaled Q columns, the head-block mask and the additive causal bias."""
    H, C, HS = wq.shape
    HHS = H * HS
    T = block_size

    def flat_w(w):                       # (H, C, HS) -> (C, H*HS), head-major columns
        return jnp.transpose(w, (1, 0, 2)).reshape(C, HHS)

    def flat_b(b):
        return b.reshape(1, HHS)

    scale = 1.0 / math.sqrt(C)           # PyTorch source: scores / sqrt(n_embd)
    w_qkv = jnp.concatenate([flat_w(wq) * scale, flat_w(wk), flat_w(wv)], axis=-1)  # (C, 3*H*HS)
    b_qkv = jnp.concatenate([flat_b(bq) * scale, flat_b(bk), flat_b(bv)], axis=-1)  # (1, 3*H*HS)

    r = jnp.arange(H * T)
    col = jnp.arange(HHS)
    head_mask = ((col[None, :] // HS) == (r[:, None] // T)).astype(jnp.float32)     # (H*T, H*HS)
    key_idx = jnp.arange(T)
    causal_bias = jnp.where(key_idx[None, :] <= (r[:, None] % T),
                            0.0, NEG_INF).astype(jnp.float32)                       # (H*T, T)

    return {
        "w_qkv": w_qkv, "b_qkv": b_qkv,
        "head_mask": head_mask, "causal_bias": causal_bias,
        "num_heads": int(H), "head_size": int(HS), "block_size": int(T),
    }


def multi_head_attention(x, params):
    """x: (B, T, C) with T == params['block_size']; returns (B, T, num_heads*head_size)."""
    B, T, C = x.shape
    H, HS = params["num_heads"], params["head_size"]
    HHS = H * HS
    assert T == params["block_size"], "masks were packed for T == block_size"

    x2d = x.reshape(B * T, C)            # sublane-dense: 16 rows x 32 lanes

    out2d = pl.pallas_call(
        partial(_mha_kernel, B=B, T=T, H=H, HS=HS),
        out_shape=jax.ShapeDtypeStruct((B * T, HHS), x.dtype),
        in_specs=[
            pl.BlockSpec(memory_space=pltpu.MemorySpace.VMEM),   # x        (whole array)
            pl.BlockSpec(memory_space=pltpu.MemorySpace.VMEM),   # w_qkv
            pl.BlockSpec(memory_space=pltpu.MemorySpace.VMEM),   # b_qkv
            pl.BlockSpec(memory_space=pltpu.MemorySpace.VMEM),   # head_mask
            pl.BlockSpec(memory_space=pltpu.MemorySpace.VMEM),   # causal_bias
        ],
        out_specs=pl.BlockSpec(memory_space=pltpu.MemorySpace.VMEM),
    )(x2d, params["w_qkv"], params["b_qkv"], params["head_mask"], params["causal_bias"])

    # Free leading-dim reshape (no transpose, no data movement).
    return out2d.reshape(B, T, HHS)


def _reference(x, wq, wk, wv, bq, bk, bv):
    """Pure-JAX reference matching the PyTorch forward (dropout = identity)."""
    B, T, C = x.shape
    outs = []
    for h in range(wq.shape[0]):
        q = x @ wq[h] + bq[h]
        k = x @ wk[h] + bk[h]
        v = x @ wv[h] + bv[h]
        w = q @ jnp.swapaxes(k, -2, -1) / math.sqrt(C)
        tril = jnp.tril(jnp.ones((T, T)))
        w = jnp.where(tril == 0, NEG_INF, w)
        w = jax.nn.softmax(w, axis=-1)
        outs.append(w @ v)
    return jnp.concatenate(outs, axis=-1)


if __name__ == "__main__":
    key = jax.random.PRNGKey(0)
    kx, kq, kk, kv, kbq, kbk, kbv = jax.random.split(key, 7)

    B, T = 2, BLOCK_SIZE
    x = jax.random.normal(kx, (B, T, N_EMBD), dtype=jnp.float32)

    # deterministic synthetic parameters (nn.Linear(n_embd, head_size) per head, with bias)
    scale = 1.0 / math.sqrt(N_EMBD)
    wq = jax.random.uniform(kq, (NUM_HEADS, N_EMBD, HEAD_SIZE), jnp.float32, -scale, scale)
    wk = jax.random.uniform(kk, (NUM_HEADS, N_EMBD, HEAD_SIZE), jnp.float32, -scale, scale)
    wv = jax.random.uniform(kv, (NUM_HEADS, N_EMBD, HEAD_SIZE), jnp.float32, -scale, scale)
    bq = jax.random.uniform(kbq, (NUM_HEADS, 1, HEAD_SIZE), jnp.float32, -scale, scale)
    bk = jax.random.uniform(kbk, (NUM_HEADS, 1, HEAD_SIZE), jnp.float32, -scale, scale)
    bv = jax.random.uniform(kbv, (NUM_HEADS, 1, HEAD_SIZE), jnp.float32, -scale, scale)

    # one-time packing (NOT on the per-call path)
    params = jax.tree_util.tree_map(
        lambda a: jax.block_until_ready(a) if isinstance(a, jax.Array) else a,
        pack_mha_params(wq, wk, wv, bq, bk, bv),
    )

    out = multi_head_attention(x, params)
    out = jax.block_until_ready(out)

    ref = _reference(x, wq, wk, wv, bq, bk, bv)
    assert out.shape == (B, T, NUM_HEADS * HEAD_SIZE)
    assert jnp.allclose(out, ref, atol=1e-4, rtol=1e-4), "mismatch vs reference"

    print("KERNEL_OK")
</pallas_src>

<mosaic_0001>
module attributes {stable_mosaic.version = 11 : i64} {
  func.func @_mha_kernel(%arg0: memref<16x32xf32, #tpu.memory_space<vmem>>, %arg1: memref<32x96xf32, #tpu.memory_space<vmem>>, %arg2: memref<1x96xf32, #tpu.memory_space<vmem>>, %arg3: memref<32x32xf32, #tpu.memory_space<vmem>>, %arg4: memref<32x8xf32, #tpu.memory_space<vmem>>, %arg5: memref<16x32xf32, #tpu.memory_space<vmem>>) attributes {dimension_semantics = [], scalar_prefetch = 0 : i64, scratch_operands = 0 : i64, tpu.core_type = #tpu.core_type<tc>} {
    %c0 = arith.constant 0 : index
    %c0_0 = arith.constant 0 : index
    %0 = vector.load %arg0[%c0, %c0_0] : memref<16x32xf32, #tpu.memory_space<vmem>>, vector<16x32xf32>
    %c0_1 = arith.constant 0 : index
    %c0_2 = arith.constant 0 : index
    %1 = vector.load %arg3[%c0_1, %c0_2] : memref<32x32xf32, #tpu.memory_space<vmem>>, vector<32x32xf32>
    %c0_3 = arith.constant 0 : index
    %c0_4 = arith.constant 0 : index
    %2 = vector.load %arg1[%c0_3, %c0_4] : memref<32x96xf32, #tpu.memory_space<vmem>>, vector<32x96xf32>
    %cst = arith.constant dense<0.000000e+00> : vector<16x96xf32>
    %3 = tpu.matmul %0, %2, %cst {dimension_numbers = #tpu.dot_dimension_numbers<[1], [0], [0], [1], [0, 0, 1, 1], [], []>} : vector<16x32xf32>, vector<32x96xf32>, vector<16x96xf32> -> vector<16x96xf32>
    %c0_5 = arith.constant 0 : index
    %c0_6 = arith.constant 0 : index
    %4 = vector.load %arg2[%c0_5, %c0_6] : memref<1x96xf32, #tpu.memory_space<vmem>>, vector<1x96xf32>
    %5 = vector.broadcast %4 : vector<1x96xf32> to vector<16x96xf32>
    %6 = arith.addf %3, %5 : vector<16x96xf32>
    %7 = vector.extract_strided_slice %6 {offsets = [0, 0], sizes = [16, 32], strides = [1, 1]} : vector<16x96xf32> to vector<16x32xf32>
    %8 = vector.shape_cast %7 : vector<16x32xf32> to vector<2x8x32xf32>
    %9 = vector.extract_strided_slice %6 {offsets = [0, 32], sizes = [16, 32], strides = [1, 1]} : vector<16x96xf32> to vector<16x32xf32>
    %10 = vector.shape_cast %9 : vector<16x32xf32> to vector<2x8x32xf32>
    %11 = vector.extract_strided_slice %6 {offsets = [0, 64], sizes = [16, 32], strides = [1, 1]} : vector<16x96xf32> to vector<16x32xf32>
    %12 = vector.shape_cast %11 : vector<16x32xf32> to vector<2x8x32xf32>
    %13 = tpu.concatenate %8, %8, %8, %8 in 1 : vector<2x8x32xf32>, vector<2x8x32xf32>, vector<2x8x32xf32>, vector<2x8x32xf32> -> vector<2x32x32xf32>
    %14 = vector.shape_cast %1 : vector<32x32xf32> to vector<1x32x32xf32>
    %15 = vector.broadcast %14 : vector<1x32x32xf32> to vector<2x32x32xf32>
    %16 = arith.mulf %13, %15 : vector<2x32x32xf32>
    "tpu.trace_start"() <{level = 10 : i32, message = "brc,bsc->brs"}> : () -> ()
    %cst_7 = arith.constant dense<0.000000e+00> : vector<2x32x8xf32>
    %17 = tpu.matmul %16, %10, %cst_7 {dimension_numbers = #tpu.dot_dimension_numbers<[2], [2], [1], [1], [0, 0, 0, 1, 1, 1], [0], [0]>} : vector<2x32x32xf32>, vector<2x8x32xf32>, vector<2x32x8xf32> -> vector<2x32x8xf32>
    "tpu.trace_stop"() : () -> ()
    %c0_8 = arith.constant 0 : index
    %c0_9 = arith.constant 0 : index
    %18 = vector.load %arg4[%c0_8, %c0_9] : memref<32x8xf32, #tpu.memory_space<vmem>>, vector<32x8xf32>
    %19 = vector.shape_cast %18 : vector<32x8xf32> to vector<1x32x8xf32>
    %20 = vector.broadcast %19 : vector<1x32x8xf32> to vector<2x32x8xf32>
    %21 = arith.addf %17, %20 : vector<2x32x8xf32>
    %cst_10 = arith.constant dense<0xFF800000> : vector<2x32xf32>
    %22 = vector.multi_reduction <maximumf>, %21, %cst_10 [2] : vector<2x32x8xf32> to vector<2x32xf32>
    %23 = vector.shape_cast %22 : vector<2x32xf32> to vector<2x32x1xf32>
    %24 = vector.broadcast %23 : vector<2x32x1xf32> to vector<2x32x8xf32>
    %25 = arith.subf %21, %24 : vector<2x32x8xf32>
    %26 = math.exp %25 : vector<2x32x8xf32>
    %cst_11 = arith.constant dense<0.000000e+00> : vector<2x32xf32>
    %27 = vector.multi_reduction <add>, %26, %cst_11 [2] : vector<2x32x8xf32> to vector<2x32xf32>
    %28 = vector.shape_cast %27 : vector<2x32xf32> to vector<2x32x1xf32>
    %29 = vector.broadcast %28 : vector<2x32x1xf32> to vector<2x32x8xf32>
    %30 = arith.divf %26, %29 : vector<2x32x8xf32>
    "tpu.trace_start"() <{level = 10 : i32, message = "brs,bsf->brf"}> : () -> ()
    %cst_12 = arith.constant dense<0.000000e+00> : vector<2x32x32xf32>
    %31 = tpu.matmul %30, %12, %cst_12 {dimension_numbers = #tpu.dot_dimension_numbers<[2], [1], [1], [2], [0, 0, 0, 1, 1, 2], [0], [0]>} : vector<2x32x8xf32>, vector<2x8x32xf32>, vector<2x32x32xf32> -> vector<2x32x32xf32>
    "tpu.trace_stop"() : () -> ()
    %32 = vector.shape_cast %1 : vector<32x32xf32> to vector<1x32x32xf32>
    %33 = vector.broadcast %32 : vector<1x32x32xf32> to vector<2x32x32xf32>
    %34 = arith.mulf %31, %33 : vector<2x32x32xf32>
    %35 = vector.extract_strided_slice %34 {offsets = [0, 0, 0], sizes = [2, 8, 32], strides = [1, 1, 1]} : vector<2x32x32xf32> to vector<2x8x32xf32>
    %36 = vector.extract_strided_slice %34 {offsets = [0, 8, 0], sizes = [2, 8, 32], strides = [1, 1, 1]} : vector<2x32x32xf32> to vector<2x8x32xf32>
    %37 = arith.addf %35, %36 : vector<2x8x32xf32>
    %38 = vector.extract_strided_slice %34 {offsets = [0, 16, 0], sizes = [2, 8, 32], strides = [1, 1, 1]} : vector<2x32x32xf32> to vector<2x8x32xf32>
    %39 = arith.addf %37, %38 : vector<2x8x32xf32>
    %40 = vector.extract_strided_slice %34 {offsets = [0, 24, 0], sizes = [2, 8, 32], strides = [1, 1, 1]} : vector<2x32x32xf32> to vector<2x8x32xf32>
    %41 = arith.addf %39, %40 : vector<2x8x32xf32>
    %42 = vector.shape_cast %41 : vector<2x8x32xf32> to vector<16x32xf32>
    %c0_13 = arith.constant 0 : index
    %c0_14 = arith.constant 0 : index
    %43 = vector.load %arg5[%c0_13, %c0_14] : memref<16x32xf32, #tpu.memory_space<vmem>>, vector<16x32xf32>
    tpu.vector_store %arg5[%c0_13, %c0_14], %42 {strides = array<i32>} : memref<16x32xf32, #tpu.memory_space<vmem>>, vector<16x32xf32>,
    return
  }
}

</mosaic_0001>

<bundles_post_ra>
// kernel: tpu_custom_call.1
= control target key start
LH: loop header
LB: loop body
LE: loop exit
PB: predicated region body
PF: predicated region fallthrough
CT: control target
= control target key end

     0   :  { %10 = vsyncpa [#allocation3], 0  ;;  %s972_s0 = inlined_call_operand.hbm [shape: f32[16,32], index: 0, kind: input, shape index: {}]   ;;  %s973_s1 = inlined_call_operand.vmem [shape: f32[32,96], index: 1, kind: input, shape index: {}]   ;;  %s974_s2 = inlined_call_operand.vmem [shape: f32[1,96], index: 2, kind: input, shape index: {}]   ;;  %s975_s3 = inlined_call_operand.hbm [shape: f32[32,32], index: 3, kind: input, shape index: {}]   ;;  %s976_s4 = inlined_call_operand.vmem [shape: f32[32,8], index: 4, kind: input, shape index: {}]   ;;  %s977_s5 = inlined_call_operand.hbm [shape: f32[16,32], index: 5, kind: output, shape index: {}]  }
   0x1   :  { %11 = vsyncpa [#allocation6], 0 }
   0x2   :  { %12 = vsyncpa [#allocation4], 0  ;;  %s17_s20 = sshll.u32 %s972_s0, 4  ;;  %s665_s21 = smov [#allocation2]   ;;  %s18_s20 = int_to_ptr.hbm [resolvable:$true] %s17_s20 }
   0x3   :  { %s19_s22 = sshll.u32 %s665_s21, 4  ;;  %s34_s25 = sshll.u32 %s975_s3, 4  ;;  %s20_s22 = int_to_ptr.vmem [resolvable:$true] %s19_s22  ;;  %s35_s25 = int_to_ptr.hbm [resolvable:$true] %s34_s25 }
   0x4   :  { %s666_s26 = smov 128   ;;  %s667_s27 = smov 8  }
   0x5   :  { %25 = dma.hbm_to_vmem [thread:$0]  %s18_s20, 256, %s20_s22, [#allocation3], %s666_s26, %s666_s26, %s667_s27  }
   0x6   :  { %s668_s28 = smov [#allocation5]  }
   0x7   :  { %s36_s29 = sshll.u32 %s668_s28, 4  ;;  %s37_s29 = int_to_ptr.vmem [resolvable:$true] %s36_s29 }
   0x8   :  { %42 = dma.hbm_to_vmem [thread:$0]  %s35_s25, 512, %s37_s29, [#allocation6], %s666_s26, %s666_s26, %s667_s27  }
   0x9   :  { %659 = dma.done.wait [#allocation3], 256  }
   0xa   :  { %660 = vsyncadd [#allocation3], 4294967040 }
   0xb   :  { %661 = dma.done.wait [#allocation6], 512  }
   0xc   :  { %662 = vsyncadd [#allocation6], 4294966784  ;;  %v62_v0 = vld [vmem:[%s973_s1 + $0x18] sm:$0xff]  ;;  %v61_v1 = vld [vmem:[%s973_s1 + $0x10] sm:$0xff]  ;;  %vm67_vm0 = vcmask 261120   ;;  %s669_s13 = smov 96  }
   0xd   :  { %86 = vmatpush.msra.mxu0 %v62_v0  ;;  %538 = vmatpush.msra.mxu3 %v62_v0  ;;  %v60_v2 = vld [vmem:[%s973_s1 + $0x8] sm:$0xff]  ;;  %v59_v3 = vld [vmem:[%s973_s1] sm:$0xff]  ;;  %v739_v12 = vld [vmem:[#allocation5] sm:$0xff]  ;;  %vm201_vm1 = vcmask 64512   ;;  %s671_s20 = smov [#allocation7]   ;;  %s504_s24 = sshll.u32 %s977_s5, 4  ;;  %s505_s24 = int_to_ptr.hbm [resolvable:$true] %s504_s24 }
   0xe   :  { %v53_v4 = vld [vmem:[#allocation2] sm:$0xff]  ;;  %v54_v5 = vld [vmem:[#allocation2 + $0x8] sm:$0xff]  ;;  %v745_v15 = vld [vmem:[#allocation5 + $0x8] sm:$0xff]  ;;  %s502_s21 = sshll.u32 %s671_s20, 4  ;;  %s503_s21 = int_to_ptr.vmem [resolvable:$true] %s502_s21 }
   0xf   :  { %87 = vmatpush.msra.mxu0 %v61_v1  ;;  %539 = vmatpush.msra.mxu3 %v61_v1  ;;  %v554_v6 = vld [vmem:[%s974_s2] ss:$0 sm:$0xff]  ;;  %v762_v22 = vld [vmem:[#allocation5 + $0x18] sm:$0xff]  ;;  %v107_v35 = vld [vmem:[%s976_s4 + $0x10] sm:$0xff] }
  0x10   :  { %v754_v19 = vld [vmem:[#allocation5 + $0x10] sm:$0xff]  ;;  %v106_v30 = vld [vmem:[%s976_s4 + $0x8] sm:$0xff]  ;;  %v108_v44 = vld [vmem:[%s976_s4 + $0x18] sm:$0xff] }
  0x11   :  { %88 = vmatpush.msra.mxu0 %v60_v2  ;;  %540 = vmatpush.msra.mxu3 %v60_v2  ;;  %v105_v26 = vld [vmem:[%s976_s4] sm:$0xff]  ;;  %s670_s4 = smov 64  }
  0x13   :  { %89 = vmatpush.msra.mxu0 %v59_v3  ;;  %541 = vmatpush.msra.mxu3 %v59_v3 }
  0x14   :  { %518 = vmatmul.msk.f32.vlgmr.msra.gmra.mxu0 %vm67_vm0, %v53_v4  ;;  %519 = vmatmul.msk.f32.vlgmr.msra.gmra.mxu3 %vm67_vm0, %v54_v5 }
  0x91   :  { %v91_v7 = vpop.f32.mrf.mxu0 }
  0x92   :  { %v731_v8 = vadd.f32 %v554_v6, %v91_v7 }
  0x94   :  { %110 = vrot.lane.b32.xlu0 %v731_v8, %s669_s13  ;;  %v97_v14 = vmul.f32 %v731_v8, %v739_v12  ;;  %v98_v17 = vmul.f32 %v731_v8, %v745_v15  ;;  %v99_v20 = vmul.f32 %v731_v8, %v754_v19  ;;  %v100_v23 = vmul.f32 %v731_v8, %v762_v22 }
  0x97   :  { %v94_v9 = vpop.f32.mrf.mxu3 }
  0x98   :  { %v734_v10 = vadd.f32 %v554_v6, %v94_v9 }
  0x9a   :  { %v549_v11 = vpack.i.bf16 %v734_v10, %v731_v8  ;;  %v101_v18 = vmul.f32 %v734_v10, %v739_v12  ;;  %v102_v21 = vmul.f32 %v734_v10, %v745_v15  ;;  %v103_v24 = vmul.f32 %v734_v10, %v754_v19 }
  0x9b   :  { %v104_v25 = vmul.f32 %v734_v10, %v762_v22 }
  0x9c   :  { %156 = vrot.lane.b32.xlu0 %v734_v10, %s669_s13 }
 0x106   :  { %v111_v13 = vpop.permute.xlu0 %110 }
 0x107   :  { %520 = vmatpush.xpose.msk.msra.mxu1 %vm67_vm0, %v111_v13 }
 0x10a   :  { %521 = vmatmul.msk.f32.vlgmr.msra.gmra.mxu1 %vm67_vm0, %v97_v14 }
 0x10e   :  { %v157_v16 = vpop.permute.xlu0 %156 }
 0x10f   :  { %525 = vmatpush.xpose.msk.msra.mxu2 %vm67_vm0, %v157_v16 }
 0x112   :  { %522 = vmatmul.msk.f32.gmra.mxu1 %vm67_vm0, %v98_v17  ;;  %526 = vmatmul.msk.f32.vlgmr.msra.gmra.mxu2 %vm67_vm0, %v101_v18 }
 0x11a   :  { %523 = vmatmul.msk.f32.gmra.mxu1 %vm67_vm0, %v99_v20  ;;  %527 = vmatmul.msk.f32.gmra.mxu2 %vm67_vm0, %v102_v21 }
 0x122   :  { %524 = vmatmul.msk.f32.gmra.mxu1 %vm67_vm0, %v100_v23  ;;  %528 = vmatmul.msk.f32.gmra.mxu2 %vm67_vm0, %v103_v24 }
 0x12a   :  { %529 = vmatmul.msk.f32.gmra.mxu2 %vm67_vm0, %v104_v25 }
 0x187   :  { %v143_v27 = vpop.f32.mrf.mxu1 }
 0x188   :  { %v144_v28 = vadd.f32 %v143_v27, %v105_v26 }
 0x18a   :  { %v202_v29 = vsel %vm201_vm1, %v144_v28, -inf }
 0x18b   :  { %203 = vmax.xlane.f32.xlu1 %v202_v29 }
 0x18f   :  { %v146_v31 = vpop.f32.mrf.mxu1 }
 0x190   :  { %v147_v32 = vadd.f32 %v146_v31, %v106_v30 }
 0x192   :  { %v205_v33 = vsel %vm201_vm1, %v147_v32, -inf }
 0x193   :  { %206 = vmax.xlane.f32.xlu2 %v205_v33 }
 0x195   :  { %v189_v34 = vpop.f32.mrf.mxu2 }
 0x196   :  { %v190_v36 = vadd.f32 %v189_v34, %v105_v26 }
 0x197   :  { %v149_v37 = vpop.f32.mrf.mxu1 }
 0x198   :  { %v150_v38 = vadd.f32 %v149_v37, %v107_v35  ;;  %v214_v39 = vsel %vm201_vm1, %v190_v36, -inf }
 0x199   :  { %215 = vmax.xlane.f32.xlu1 %v214_v39 }
 0x19a   :  { %v208_v40 = vsel %vm201_vm1, %v150_v38, -inf }
 0x19b   :  { %209 = vmax.xlane.f32.xlu0 %v208_v40 }
 0x19d   :  { %v192_v41 = vpop.f32.mrf.mxu2 }
 0x19e   :  { %v193_v42 = vadd.f32 %v192_v41, %v106_v30 }
 0x19f   :  { %v152_v45 = vpop.f32.mrf.mxu1 }
 0x1a0   :  { %v217_v43 = vsel %vm201_vm1, %v193_v42, -inf  ;;  %v153_v46 = vadd.f32 %v152_v45, %v108_v44 }
 0x1a1   :  { %218 = vmax.xlane.f32.xlu2 %v217_v43 }
 0x1a2   :  { %v211_v49 = vsel %vm201_vm1, %v153_v46, -inf }
 0x1a5   :  { %v195_v47 = vpop.f32.mrf.mxu2 }
 0x1a6   :  { %v196_v48 = vadd.f32 %v195_v47, %v107_v35 }
 0x1a8   :  { %v220_v50 = vsel %vm201_vm1, %v196_v48, -inf }
 0x1a9   :  { %212 = vmax.xlane.f32.xlu2 %v211_v49  ;;  %221 = vmax.xlane.f32.xlu1 %v220_v50 }
 0x1ad   :  { %v198_v51 = vpop.f32.mrf.mxu2 }
 0x1ae   :  { %v199_v52 = vadd.f32 %v198_v51, %v108_v44 }
 0x1b0   :  { %v223_v53 = vsel %vm201_vm1, %v199_v52, -inf }
 0x1b1   :  { %224 = vmax.xlane.f32.xlu1 %v223_v53 }
 0x1fe   :  { %v204_v54 = vpop.xlane.xlu1 %203 }
 0x1ff   :  { %v226_v55 = vsub.f32 %v144_v28, %v204_v54 }
 0x201   :  { %v234_v56 = vmul.f32 1.442695, %v226_v55 }
 0x203   :  { %555 = vpow2.f32 %v234_v56 }
 0x206   :  { %v207_v57 = vpop.xlane.xlu2 %206 }
 0x207   :  { %v227_v58 = vsub.f32 %v147_v32, %v207_v57 }
 0x209   :  { %v793_v59 = vpop.eup %555  ;;  %v236_v60 = vmul.f32 1.442695, %v227_v58 }
 0x20a   :  { %v250_v61 = vsel %vm201_vm1, %v793_v59, 0.0 }
 0x20b   :  { %557 = vpow2.f32 %v236_v60  ;;  %251 = vadd.xlane.f32.xlu2 %v250_v61 }
 0x20c   :  { %v216_v62 = vpop.xlane.xlu1 %215 }
 0x20d   :  { %v230_v63 = vsub.f32 %v190_v36, %v216_v62 }
 0x20e   :  { %v210_v0 = vpop.xlane.xlu0 %209 }
 0x20f   :  { %v242_v1 = vmul.f32 1.442695, %v230_v63  ;;  %v228_v2 = vsub.f32 %v150_v38, %v210_v0 }
 0x211   :  { %v797_v3 = vpop.eup %557  ;;  %559 = vpow2.f32 %v242_v1  ;;  %v238_v4 = vmul.f32 1.442695, %v228_v2 }
 0x212   :  { %v253_v5 = vsel %vm201_vm1, %v797_v3, 0.0 }
 0x213   :  { %561 = vpow2.f32 %v238_v4  ;;  %254 = vadd.xlane.f32.xlu2 %v253_v5 }
 0x214   :  { %v219_v6 = vpop.xlane.xlu2 %218 }
 0x215   :  { %v231_v7 = vsub.f32 %v193_v42, %v219_v6 }
 0x217   :  { %v801_v9 = vpop.eup %559  ;;  %v244_v13 = vmul.f32 1.442695, %v231_v7 }
 0x218   :  { %v262_v14 = vsel %vm201_vm1, %v801_v9, 0.0 }
 0x219   :  { %v805_v16 = vpop.eup %561  ;;  %563 = vpow2.f32 %v244_v13  ;;  %263 = vadd.xlane.f32.xlu1 %v262_v14 }
 0x21a   :  { %v256_v17 = vsel %vm201_vm1, %v805_v16, 0.0 }
 0x21b   :  { %257 = vadd.xlane.f32.xlu2 %v256_v17 }
 0x21c   :  { %v222_v18 = vpop.xlane.xlu1 %221  ;;  %v213_v20 = vpop.xlane.xlu2 %212 }
 0x21d   :  { %v232_v21 = vsub.f32 %v196_v48, %v222_v18  ;;  %v229_v25 = vsub.f32 %v153_v46, %v213_v20 }
 0x21f   :  { %v809_v23 = vpop.eup %563  ;;  %v246_v24 = vmul.f32 1.442695, %v232_v21  ;;  %v240_v27 = vmul.f32 1.442695, %v229_v25 }
 0x220   :  { %v265_v26 = vsel %vm201_vm1, %v809_v23, 0.0 }
 0x221   :  { %266 = vadd.xlane.f32.xlu1 %v265_v26  ;;  %565 = vpow2.f32 %v246_v24 }
 0x222   :  { %567 = vpow2.f32 %v240_v27 }
 0x224   :  { %v225_v28 = vpop.xlane.xlu1 %224 }
 0x225   :  { %v233_v29 = vsub.f32 %v199_v52, %v225_v28 }
 0x227   :  { %v248_v30 = vmul.f32 1.442695, %v233_v29  ;;  %v813_v31 = vpop.eup %565 }
 0x228   :  { %v268_v32 = vsel %vm201_vm1, %v813_v31, 0.0  ;;  %v817_v33 = vpop.eup %567 }
 0x229   :  { %569 = vpow2.f32 %v248_v30  ;;  %269 = vadd.xlane.f32.xlu2 %v268_v32  ;;  %v259_v36 = vsel %vm201_vm1, %v817_v33, 0.0 }
 0x22f   :  { %v819_v34 = vpop.eup %569 }
 0x230   :  { %v271_v35 = vsel %vm201_vm1, %v819_v34, 0.0 }
 0x231   :  { %272 = vadd.xlane.f32.xlu0 %v271_v35  ;;  %260 = vadd.xlane.f32.xlu2 %v259_v36 }
 0x23a   :  { %550 = vrot.lane.b32.xlu1 %v549_v11, %s670_s4 }
 0x27e   :  { %v252_v37 = vpop.xlane.xlu2 %251 }
 0x27f   :  { %571 = vrcp.f32 %v252_v37  ;;  %v285_v56 = vand.u32 2147483648, %v252_v37  ;;  %vm279_vm4 = vweird.f32 %v252_v37  ;;  %v283_v61 = vand.u32 2147483647, %v252_v37 }
 0x281   :  { %v286_v13 = vor.u32 1.1754944e-38, %v285_v56  ;;  %vm284_vm8 = vcmp.eq.f32.partialorder %v283_v61, 8.507059e+37 }
 0x285   :  { %v572_v40 = vpop.eup %571 }
 0x286   :  { %v828_v38 = vpop.xlane.xlu2 %254  ;;  %v275_v44 = vmul.f32 %v572_v40, %v252_v37  ;;  %vm280_vm2 = vweird.f32 %v572_v40 }
 0x287   :  { %vm856_vm5 = vmor %vm279_vm4, %vm280_vm2  ;;  %vm294_vm12 = vweird.f32 %v828_v38  ;;  %v300_v28 = vand.u32 2147483648, %v828_v38 }
 0x288   :  { %v276_v10 = vsub.f32 1.0, %v275_v44  ;;  %v298_v44 = vand.u32 2147483647, %v828_v38 }
 0x28a   :  { %v277_v49 = vmul.f32 %v572_v40, %v276_v10  ;;  %vm299_vm2 = vcmp.eq.f32.partialorder %v298_v44, 8.507059e+37 }
 0x28c   :  { %v264_v39 = vpop.xlane.xlu1 %263  ;;  %v278_v53 = vadd.f32 %v572_v40, %v277_v49  ;;  %v301_v49 = vor.u32 1.1754944e-38, %v300_v28 }
 0x28d   :  { %573 = vrcp.f32 %v264_v39  ;;  %v345_v62 = vand.u32 2147483648, %v264_v39  ;;  %vm339_vm6 = vweird.f32 %v264_v39  ;;  %v343_v2 = vand.u32 2147483647, %v264_v39 }
 0x28e   :  { %575 = vrcp.f32 %v828_v38  ;;  %v833_v43 = vpop.xlane.xlu2 %257  ;;  %v282_v7 = vsel %vm856_vm5, %v572_v40, %v278_v53 }
 0x28f   :  { %v346_v18 = vor.u32 1.1754944e-38, %v345_v62  ;;  %vm344_vm9 = vcmp.eq.f32.partialorder %v343_v2, 8.507059e+37  ;;  %v287_v20 = vsel %vm284_vm8, %v286_v13, %v282_v7  ;;  %v313_v61 = vand.u32 2147483647, %v833_v43 }
 0x290   :  { %v288_v40 = vmul.f32 %v793_v59, %v287_v20 }
 0x293   :  { %v574_v42 = vpop.eup %573 }
 0x294   :  { %v830_v41 = vpop.xlane.xlu1 %266  ;;  %v335_v45 = vmul.f32 %v574_v42, %v264_v39  ;;  %v836_v8 = vpop.eup %575  ;;  %vm340_vm3 = vweird.f32 %v574_v42 }
 0x295   :  { %577 = vrcp.f32 %v830_v41  ;;  %v290_v48 = vmul.f32 %v836_v8, %v828_v38  ;;  %vm862_vm7 = vmor %vm339_vm6, %vm340_vm3  ;;  %vm295_vm10 = vweird.f32 %v836_v8  ;;  %vm354_vm13 = vweird.f32 %v830_v41 }
 0x296   :  { %v336_v46 = vsub.f32 1.0, %v335_v45  ;;  %579 = vrcp.f32 %v833_v43  ;;  %v360_v35 = vand.u32 2147483648, %v830_v41  ;;  %vm890_vm14 = vmor %vm294_vm12, %vm295_vm10  ;;  %v358_v10 = vand.u32 2147483647, %v830_v41 }
 0x297   :  { %v291_v52 = vsub.f32 1.0, %v290_v48  ;;  %vm309_vm6 = vweird.f32 %v833_v43  ;;  %vm314_vm10 = vcmp.eq.f32.partialorder %v313_v61, 8.507059e+37 }
 0x298   :  { %v337_v51 = vmul.f32 %v574_v42, %v336_v46  ;;  %vm359_vm3 = vcmp.eq.f32.partialorder %v358_v10, 8.507059e+37 }
 0x299   :  { %v292_v1 = vmul.f32 %v836_v8, %v291_v52 }
 0x29a   :  { %v338_v57 = vadd.f32 %v574_v42, %v337_v51 }
 0x29b   :  { %v838_v11 = vpop.eup %577  ;;  %v293_v21 = vadd.f32 %v836_v8, %v292_v1 }
 0x29c   :  { %v840_v47 = vpop.xlane.xlu2 %269  ;;  %v350_v50 = vmul.f32 %v838_v11, %v830_v41  ;;  %v848_v55 = vpop.eup %579  ;;  %v342_v17 = vsel %vm862_vm7, %v574_v42, %v338_v57  ;;  %vm355_vm11 = vweird.f32 %v838_v11 }
 0x29d   :  { %581 = vrcp.f32 %v840_v47  ;;  %v305_v5 = vmul.f32 %v848_v55, %v833_v43  ;;  %v347_v25 = vsel %vm344_vm9, %v346_v18, %v342_v17  ;;  %vm899_vm15 = vmor %vm354_vm13, %vm355_vm11  ;;  %v297_v59 = vsel %vm890_vm14, %v836_v8, %v293_v21 }
 0x29e   :  { %v351_v54 = vsub.f32 1.0, %v350_v50  ;;  %v348_v42 = vmul.f32 %v801_v9, %v347_v25  ;;  %v361_v50 = vor.u32 1.1754944e-38, %v360_v35  ;;  %v315_v8 = vand.u32 2147483648, %v833_v43 }
 0x29f   :  { %v306_v24 = vsub.f32 1.0, %v305_v5  ;;  %v302_v51 = vsel %vm299_vm2, %v301_v49, %v297_v59  ;;  %vm310_vm4 = vweird.f32 %v848_v55  ;;  %v375_v57 = vand.u32 2147483648, %v840_v47 }
 0x2a0   :  { %v352_v6 = vmul.f32 %v838_v11, %v351_v54  ;;  %vm369_vm7 = vweird.f32 %v840_v47  ;;  %v303_v62 = vmul.f32 %v797_v3, %v302_v51  ;;  %vm311_vm8 = vmor %vm309_vm6, %vm310_vm4  ;;  %v373_v1 = vand.u32 2147483647, %v840_v47 }
 0x2a1   :  { %v307_v46 = vmul.f32 %v848_v55, %v306_v24  ;;  %v316_v4 = vor.u32 1.1754944e-38, %v315_v8  ;;  %v376_v3 = vor.u32 1.1754944e-38, %v375_v57 }
 0x2a2   :  { %v353_v26 = vadd.f32 %v838_v11, %v352_v6  ;;  %vm374_vm11 = vcmp.eq.f32.partialorder %v373_v1, 8.507059e+37 }
 0x2a3   :  { %v852_v60 = vpop.eup %581  ;;  %v308_v52 = vadd.f32 %v848_v55, %v307_v46 }
 0x2a4   :  { %v850_v58 = vpop.xlane.xlu0 %272  ;;  %v854_v63 = vpop.xlane.xlu2 %260  ;;  %v365_v14 = vmul.f32 %v852_v60, %v840_v47  ;;  %v357_v9 = vsel %vm899_vm15, %v838_v11, %v353_v26  ;;  %vm370_vm5 = vweird.f32 %v852_v60 }
 0x2a5   :  { %583 = vrcp.f32 %v850_v58  ;;  %v362_v11 = vsel %vm359_vm3, %v361_v50, %v357_v9  ;;  %v312_v2 = vsel %vm311_vm8, %v848_v55, %v308_v52  ;;  %vm371_vm9 = vmor %vm369_vm7, %vm370_vm5  ;;  %v330_v13 = vand.u32 2147483648, %v854_v63 }
 0x2a6   :  { %585 = vrcp.f32 %v854_v63  ;;  %v366_v29 = vsub.f32 1.0, %v365_v14  ;;  %v363_v0 = vmul.f32 %v809_v23, %v362_v11  ;;  %v317_v23 = vsel %vm314_vm10, %v316_v4, %v312_v2 }
 0x2a7   :  { %vm384_vm14 = vweird.f32 %v850_v58  ;;  %v390_v14 = vand.u32 2147483648, %v850_v58  ;;  %vm324_vm15 = vweird.f32 %v854_v63  ;;  %v328_v17 = vand.u32 2147483647, %v854_v63 }
 0x2a8   :  { %v367_v38 = vmul.f32 %v852_v60, %v366_v29  ;;  %v388_v18 = vand.u32 2147483647, %v850_v58  ;;  %v331_v25 = vor.u32 1.1754944e-38, %v330_v13 }
 0x2a9   :  { %vm329_vm4 = vcmp.eq.f32.partialorder %v328_v17, 8.507059e+37 }
 0x2aa   :  { %v368_v56 = vadd.f32 %v852_v60, %v367_v38  ;;  %vm389_vm5 = vcmp.eq.f32.partialorder %v388_v18, 8.507059e+37 }
 0x2ab   :  { %v880_v27 = vpop.eup %583 }
 0x2ac   :  { %v551_v30 = vpop.permute.xlu1 %550  ;;  %v884_v32 = vpop.eup %585  ;;  %v380_v41 = vmul.f32 %v880_v27, %v850_v58  ;;  %v372_v43 = vsel %vm371_vm9, %v852_v60, %v368_v56  ;;  %vm385_vm12 = vweird.f32 %v880_v27  ;;  %v318_v60 = vmul.f32 %v805_v16, %v317_v23 }
 0x2ad   :  { %v553_v36 = vunpack.i.h.bf16 %v551_v30  ;;  %v552_v37 = vunpack.i.l.bf16 %v551_v30  ;;  %v320_v48 = vmul.f32 %v884_v32, %v854_v63  ;;  %v377_v47 = vsel %vm374_vm11, %v376_v3, %v372_v43  ;;  %vm386_vm2 = vmor %vm384_vm14, %vm385_vm12 }
 0x2ae   :  { %v381_v54 = vsub.f32 1.0, %v380_v41  ;;  %vm325_vm13 = vweird.f32 %v884_v32  ;;  %v378_v20 = vmul.f32 %v813_v31, %v377_v47  ;;  %v391_v16 = vor.u32 1.1754944e-38, %v390_v14 }
 0x2af   :  { %424 = vmatpush.msrb.mxu3 %v552_v37  ;;  %468 = vmatpush.msrb.mxu0 %v553_v36  ;;  %v321_v53 = vsub.f32 1.0, %v320_v48  ;;  %vm326_vm3 = vmor %vm324_vm15, %vm325_vm13 }
 0x2b0   :  { %530 = vmatmul.msk.f32.vlgmr.msrb.gmra.mxu3 %vm201_vm1, %v288_v40  ;;  %534 = vmatmul.msk.f32.vlgmr.msrb.gmra.mxu0 %vm201_vm1, %v348_v42  ;;  %v382_v6 = vmul.f32 %v880_v27, %v381_v54 }
 0x2b1   :  { %v322_v5 = vmul.f32 %v884_v32, %v321_v53 }
 0x2b2   :  { %v383_v7 = vadd.f32 %v880_v27, %v382_v6 }
 0x2b3   :  { %v323_v55 = vadd.f32 %v884_v32, %v322_v5 }
 0x2b4   :  { %v387_v24 = vsel %vm386_vm2, %v880_v27, %v383_v7 }
 0x2b5   :  { %v327_v21 = vsel %vm326_vm3, %v884_v32, %v323_v55  ;;  %v392_v63 = vsel %vm389_vm5, %v391_v16, %v387_v24 }
 0x2b6   :  { %v332_v26 = vsel %vm329_vm4, %v331_v25, %v327_v21  ;;  %v393_v58 = vmul.f32 %v819_v34, %v392_v63 }
 0x2b7   :  { %v333_v28 = vmul.f32 %v817_v33, %v332_v26 }
 0x2b8   :  { %531 = vmatmul.msk.f32.gmra.mxu3 %vm201_vm1, %v303_v62  ;;  %535 = vmatmul.msk.f32.gmra.mxu0 %vm201_vm1, %v363_v0 }
 0x2c0   :  { %532 = vmatmul.msk.f32.gmra.mxu3 %vm201_vm1, %v318_v60  ;;  %536 = vmatmul.msk.f32.gmra.mxu0 %vm201_vm1, %v378_v20 }
 0x2c8   :  { %533 = vmatmul.msk.f32.gmra.mxu3 %vm201_vm1, %v333_v28  ;;  %537 = vmatmul.msk.f32.gmra.mxu0 %vm201_vm1, %v393_v58 }
 0x32d   :  { %v470_v31 = vpop.f32.mrf.mxu0 }
 0x32e   :  { %v486_v36 = vmul.f32 %v470_v31, %v739_v12 }
 0x333   :  { %v426_v29 = vpop.f32.mrf.mxu3 }
 0x334   :  { %v482_v45 = vmul.f32 %v426_v29, %v739_v12 }
 0x335   :  { %v473_v30 = vpop.f32.mrf.mxu0 }
 0x336   :  { %v487_v27 = vmul.f32 %v473_v30, %v745_v15 }
 0x338   :  { %v491_v40 = vadd.f32 %v487_v27, %v486_v36 }
 0x33b   :  { %v429_v32 = vpop.f32.mrf.mxu3 }
 0x33c   :  { %v483_v34 = vmul.f32 %v429_v32, %v745_v15 }
 0x33d   :  { %v476_v35 = vpop.f32.mrf.mxu0 }
 0x33e   :  { %v488_v37 = vmul.f32 %v476_v35, %v754_v19  ;;  %v490_v59 = vadd.f32 %v483_v34, %v482_v45 }
 0x340   :  { %v493_v42 = vadd.f32 %v491_v40, %v488_v37 }
 0x343   :  { %v432_v39 = vpop.f32.mrf.mxu3 }
 0x344   :  { %v484_v10 = vmul.f32 %v432_v39, %v754_v19 }
 0x345   :  { %v479_v33 = vpop.f32.mrf.mxu0 }
 0x346   :  { %v489_v44 = vmul.f32 %v479_v33, %v762_v22  ;;  %v492_v38 = vadd.f32 %v490_v59, %v484_v10 }
 0x348   :  { %v495_v46 = vadd.f32 %v493_v42, %v489_v44 }
 0x34a   :  { %497 = vst.msk [vmem:[#allocation7 + $0x8] sm:$0xff] %vm67_vm0, %v495_v46 }
 0x34b   :  { %v435_v9 = vpop.f32.mrf.mxu3 }
 0x34c   :  { %v485_v15 = vmul.f32 %v435_v9, %v762_v22 }
 0x34e   :  { %v494_v48 = vadd.f32 %v492_v38, %v485_v15 }
 0x350   :  { %496 = vst.msk [vmem:[#allocation7] sm:$0xff] %vm67_vm0, %v494_v48 }
 0x351   :  { %510 = dma.vmem_to_hbm [thread:$0]  %s503_s21, 256, %s505_s24, [#allocation4], %s666_s26, %s666_s26, %s667_s27  }
 0x352   :  { %663 = dma.done.wait [#allocation4], 256  }
 0x353   :  { %664 = vsyncadd [#allocation4], 4294967040 }
 0x354   :  { %515 = vsyncpa [#allocation3], 1 }
 0x355   :  { %516 = vsyncpa [#allocation6], 1 }
 0x356   :  { %517 = vsyncpa [#allocation4], 1 }

</bundles_post_ra>
